<compile_context>
chip_gen: v6e
topology: v6e:2x2x1
jax: 0.10.0
libtpu: 0.0.40
codegen_flags: <defaults>
</compile_context>

<pallas_src>
import functools

import jax
import jax.numpy as jnp
from jax.experimental import pallas as pl
from jax.experimental.pallas import tpu as pltpu


def _round_up(x, m):
    return ((x + m - 1) // m) * m


def _choose_tb(B, in_dim, h_pad, c_pad, act_itemsize):
    """Batch tile: >=4 grid steps for large B, VMEM-budgeted, prefer tb | B."""
    if B <= 128:
        return B  # single step; splitting tiny batches only adds pipeline overhead
    target = min(512, _round_up(pl.cdiv(B, 4), 8))

    # Rough VMEM budget (~24 MiB): double-buffered x/out tiles + resident weights
    # + f32 intermediates.  Conservative (weights counted as f32).
    budget = 24 * 1024 * 1024
    weight_bytes = (in_dim * h_pad + h_pad * c_pad + 4 * max(h_pad, c_pad)) * 4

    def fits(tb):
        act_bytes = 2 * tb * (in_dim + c_pad) * act_itemsize  # double-buffered tiles
        tmp_bytes = tb * (h_pad + c_pad) * 4                  # f32 h / y intermediates
        return weight_bytes + act_bytes + tmp_bytes <= budget

    while target > 8 and not fits(target):
        target -= 8

    # Prefer a tile that divides B exactly (kills the wrapper pad + row-slice HBM pass).
    for tb in range(target, 7, -8):
        if B % tb == 0:
            return tb
    return target


def _ir_cls_kernel(x_ref, w1_ref, w2_ref, p_ref, o_ref, *, h_pad, c_dim, c_pad, eps):
    # x_ref:  (TB, in_dim)           incoming dtype (f32 or bf16) -> fed to MXU as-is
    # w1_ref: (in_dim, h_pad)        columns >= h_dim are zero
    # w2_ref: (h_pad, c_pad)         rows >= h_dim and cols >= c_dim are zero
    # p_ref:  (4, P)  row0=b1(pad 0), row1=b2, row2=gamma, row3=beta   (small -> f32)
    # o_ref:  (TB, c_pad)            output tile (lane-dense when c_dim < 128)
    x = x_ref[...]
    w1 = w1_ref[...]
    w2 = w2_ref[...]
    p = p_ref[...].astype(jnp.float32)

    b1 = p[0:1, :h_pad]
    b2 = p[1:2, :c_pad]
    gamma = p[2:3, :c_pad]
    beta = p[3:4, :c_pad]

    # cls_lin1 + ReLU: MXU consumes x/w1 in their native dtype, accumulates in f32.
    h = jnp.dot(x, w1, preferred_element_type=jnp.float32) + b1
    h = jnp.maximum(h, 0.0)

    # cls_lin2: if weights are low precision, feed the MXU matching low-precision LHS.
    if jnp.dtype(w2_ref.dtype).itemsize < 4:
        h = h.astype(w2_ref.dtype)
    y = jnp.dot(h, w2, preferred_element_type=jnp.float32) + b2

    # LayerNorm over the TRUE c_dim features (PyTorch eps).  Padded y columns are
    # exactly zero, so plain sums give the true statistics; E[y^2]-mean^2 avoids a
    # per-step iota/compare/mask multiply.
    inv_c = 1.0 / float(c_dim)
    mean = jnp.sum(y, axis=-1, keepdims=True) * inv_c
    var = jnp.sum(y * y, axis=-1, keepdims=True) * inv_c - mean * mean
    var = jnp.maximum(var, 0.0)
    y_norm = (y - mean) * jax.lax.rsqrt(var + eps)

    # gamma/beta pads are zero -> padded output columns are zero (sliced in wrapper).
    o_ref[...] = (y_norm * gamma + beta).astype(o_ref.dtype)


def ir_cls_forward(x, w1, b1, w2, b2, gamma, beta, *, tb=None, eps=1e-5):
    """x: (B, in_dim). w1: (in_dim, h_dim), w2: (h_dim, c_dim) pre-transposed.
    b1/b2/gamma/beta: (1, dim). Returns (B, c_dim) in x.dtype."""
    B, in_dim = x.shape
    h_dim = w1.shape[1]
    c_dim = w2.shape[1]
    f32 = jnp.float32

    # Hidden dim padded to 128 lanes (aligns matmul-1 output / matmul-2 contraction).
    h_pad = _round_up(h_dim, 128)
    # Class dim: lane-dense pad only when genuinely small; otherwise write true width
    # (a masked vst on the last lane group beats an extra HBM pass for a column slice).
    c_pad = 128 if c_dim < 128 else c_dim
    P = max(h_pad, c_pad)

    # Pad weights / pack small params once (tiny, weight-sized work).
    w1p = jnp.pad(w1, ((0, 0), (0, h_pad - h_dim))) if h_pad != h_dim else w1
    w2p = (jnp.pad(w2, ((0, h_pad - h_dim), (0, c_pad - c_dim)))
           if (h_pad != h_dim or c_pad != c_dim) else w2)
    params = jnp.concatenate(
        [
            jnp.pad(b1.reshape(1, h_dim).astype(f32), ((0, 0), (0, P - h_dim))),
            jnp.pad(b2.reshape(1, c_dim).astype(f32), ((0, 0), (0, P - c_dim))),
            jnp.pad(gamma.reshape(1, c_dim).astype(f32), ((0, 0), (0, P - c_dim))),
            jnp.pad(beta.reshape(1, c_dim).astype(f32), ((0, 0), (0, P - c_dim))),
        ],
        axis=0,
    )  # (4, P)

    if tb is None:
        tb = _choose_tb(B, in_dim, h_pad, c_pad, jnp.dtype(x.dtype).itemsize)
    n_steps = pl.cdiv(B, tb)
    Bp = n_steps * tb
    xp = jnp.pad(x, ((0, Bp - B), (0, 0))) if Bp != B else x

    kernel = functools.partial(
        _ir_cls_kernel, h_pad=h_pad, c_dim=c_dim, c_pad=c_pad, eps=eps
    )

    itemsize = jnp.dtype(x.dtype).itemsize
    cost = pl.CostEstimate(
        flops=2 * Bp * in_dim * h_pad + 2 * Bp * h_pad * c_pad + 10 * Bp * c_pad,
        transcendentals=Bp,
        bytes_accessed=(xp.size * itemsize
                        + w1p.size * jnp.dtype(w1p.dtype).itemsize
                        + w2p.size * jnp.dtype(w2p.dtype).itemsize
                        + params.size * 4
                        + Bp * c_pad * itemsize),
    )

    def _run(single_buffer_weights):
        w_kwargs = (
            dict(pipeline_mode=pl.Buffered(1)) if single_buffer_weights else {}
        )
        grid_spec = pltpu.PrefetchScalarGridSpec(
            num_scalar_prefetch=0,
            grid=(n_steps,),
            in_specs=[
                pl.BlockSpec((tb, in_dim), lambda i: (i, 0)),               # x tile
                pl.BlockSpec((in_dim, h_pad), lambda i: (0, 0), **w_kwargs),  # W1
                pl.BlockSpec((h_pad, c_pad), lambda i: (0, 0), **w_kwargs),   # W2
                pl.BlockSpec((4, P), lambda i: (0, 0), **w_kwargs),           # params
            ],
            out_specs=pl.BlockSpec((tb, c_pad), lambda i: (i, 0)),
        )
        return pl.pallas_call(
            kernel,
            out_shape=jax.ShapeDtypeStruct((Bp, c_pad), x.dtype),
            grid_spec=grid_spec,
            compiler_params=pltpu.CompilerParams(
                dimension_semantics=("parallel",),
            ),
            cost_estimate=cost,
        )(xp, w1p, w2p, params)

    try:
        out = _run(True)
    except Exception:
        # pl.Buffered(1) not supported by this jax version -> default double buffering.
        out = _run(False)

    if Bp != B:
        out = out[:B]
    if c_pad != c_dim:
        out = out[:, :c_dim]
    return out


if __name__ == "__main__":
    # Small shapes consistent with the module: batch=16, in_dim=32, h_dim=64, c_dim=32
    B, in_dim, h_dim, c_dim = 16, 32, 64, 32

    key = jax.random.PRNGKey(0)
    kx, kw1, kb1, kw2, kb2 = jax.random.split(key, 5)

    x = jax.random.normal(kx, (B, in_dim), dtype=jnp.float32)

    # Deterministic parameter init (shapes match nn.Linear / nn.LayerNorm), stored as
    # (in, out) so the kernel computes x @ W directly.
    w1 = jax.random.uniform(kw1, (in_dim, h_dim), dtype=jnp.float32,
                            minval=-0.1, maxval=0.1)
    b1 = jax.random.uniform(kb1, (1, h_dim), dtype=jnp.float32,
                            minval=-0.1, maxval=0.1)
    w2 = jax.random.uniform(kw2, (h_dim, c_dim), dtype=jnp.float32,
                            minval=-0.1, maxval=0.1)
    b2 = jax.random.uniform(kb2, (1, c_dim), dtype=jnp.float32,
                            minval=-0.1, maxval=0.1)
    gamma = jnp.ones((1, c_dim), dtype=jnp.float32)   # LayerNorm weight default
    beta = jnp.zeros((1, c_dim), dtype=jnp.float32)   # LayerNorm bias default

    out = ir_cls_forward(x, w1, b1, w2, b2, gamma, beta)
    out = jax.block_until_ready(out)

    # Cross-check against a plain-JAX reference of the same forward pass.
    h_ref = jnp.maximum(x @ w1 + b1, 0.0)
    y_ref = h_ref @ w2 + b2
    mu = jnp.mean(y_ref, axis=-1, keepdims=True)
    var = jnp.mean((y_ref - mu) ** 2, axis=-1, keepdims=True)
    ref = (y_ref - mu) / jnp.sqrt(var + 1e-5) * gamma + beta
    assert out.shape == (B, c_dim)
    assert jnp.allclose(out, ref, atol=1e-4, rtol=1e-4)

    print("KERNEL_OK")
</pallas_src>

<mosaic_0001>
module attributes {stable_mosaic.version = 11 : i64} {
  func.func @_ir_cls_kernel(%arg0: i32, %arg1: memref<16x32xf32, #tpu.memory_space<vmem>>, %arg2: memref<32x128xf32, #tpu.memory_space<vmem>>, %arg3: memref<128x128xf32, #tpu.memory_space<vmem>>, %arg4: memref<4x128xf32, #tpu.memory_space<vmem>>, %arg5: memref<16x128xf32, #tpu.memory_space<vmem>>) attributes {dimension_semantics = [#tpu.dimension_semantics<parallel>], iteration_bounds = array<i64: 1>, scalar_prefetch = 0 : i64, scratch_operands = 0 : i64, tpu.core_type = #tpu.core_type<tc>, window_params = [{transform_indices = @transform_0, window_bounds = array<i64: 16, 32>}, {pipeline_mode = #tpu.pipeline_mode<synchronous>, transform_indices = @transform_1, window_bounds = array<i64: 32, 128>}, {pipeline_mode = #tpu.pipeline_mode<synchronous>, transform_indices = @transform_2, window_bounds = array<i64: 128, 128>}, {pipeline_mode = #tpu.pipeline_mode<synchronous>, transform_indices = @transform_3, window_bounds = array<i64: 4, 128>}, {transform_indices = @transform_4, window_bounds = array<i64: 16, 128>}]} {
    %c0 = arith.constant 0 : index
    %c0_0 = arith.constant 0 : index
    %0 = vector.load %arg1[%c0, %c0_0] : memref<16x32xf32, #tpu.memory_space<vmem>>, vector<16x32xf32>
    %c0_1 = arith.constant 0 : index
    %c0_2 = arith.constant 0 : index
    %1 = vector.load %arg2[%c0_1, %c0_2] : memref<32x128xf32, #tpu.memory_space<vmem>>, vector<32x128xf32>
    %c0_3 = arith.constant 0 : index
    %c0_4 = arith.constant 0 : index
    %2 = vector.load %arg3[%c0_3, %c0_4] : memref<128x128xf32, #tpu.memory_space<vmem>>, vector<128x128xf32>
    %c0_5 = arith.constant 0 : index
    %c0_6 = arith.constant 0 : index
    %3 = vector.load %arg4[%c0_5, %c0_6] : memref<4x128xf32, #tpu.memory_space<vmem>>, vector<4x128xf32>
    %4 = vector.extract_strided_slice %3 {offsets = [0, 0], sizes = [1, 128], strides = [1, 1]} : vector<4x128xf32> to vector<1x128xf32>
    %5 = vector.extract_strided_slice %3 {offsets = [1, 0], sizes = [1, 128], strides = [1, 1]} : vector<4x128xf32> to vector<1x128xf32>
    %6 = vector.extract_strided_slice %3 {offsets = [2, 0], sizes = [1, 128], strides = [1, 1]} : vector<4x128xf32> to vector<1x128xf32>
    %7 = vector.extract_strided_slice %3 {offsets = [3, 0], sizes = [1, 128], strides = [1, 1]} : vector<4x128xf32> to vector<1x128xf32>
    %cst = arith.constant dense<0.000000e+00> : vector<16x128xf32>
    %8 = tpu.matmul %0, %1, %cst {dimension_numbers = #tpu.dot_dimension_numbers<[1], [0], [0], [1], [0, 0, 1, 1], [], []>} : vector<16x32xf32>, vector<32x128xf32>, vector<16x128xf32> -> vector<16x128xf32>
    %9 = vector.broadcast %4 : vector<1x128xf32> to vector<16x128xf32>
    %10 = arith.addf %8, %9 : vector<16x128xf32>
    %cst_7 = arith.constant 0.000000e+00 : f32
    %11 = vector.broadcast %cst_7 : f32 to vector<16x128xf32>
    %12 = arith.maximumf %10, %11 : vector<16x128xf32>
    %cst_8 = arith.constant dense<0.000000e+00> : vector<16x128xf32>
    %13 = tpu.matmul %12, %2, %cst_8 {dimension_numbers = #tpu.dot_dimension_numbers<[1], [0], [0], [1], [0, 0, 1, 1], [], []>} : vector<16x128xf32>, vector<128x128xf32>, vector<16x128xf32> -> vector<16x128xf32>
    %14 = vector.broadcast %5 : vector<1x128xf32> to vector<16x128xf32>
    %15 = arith.addf %13, %14 : vector<16x128xf32>
    %cst_9 = arith.constant dense<0.000000e+00> : vector<16xf32>
    %16 = vector.multi_reduction <add>, %15, %cst_9 [1] : vector<16x128xf32> to vector<16xf32>
    %17 = vector.shape_cast %16 : vector<16xf32> to vector<16x1xf32>
    %cst_10 = arith.constant 3.125000e-02 : f32
    %18 = vector.broadcast %cst_10 : f32 to vector<16x1xf32>
    %19 = arith.mulf %17, %18 : vector<16x1xf32>
    %20 = arith.mulf %15, %15 : vector<16x128xf32>
    %cst_11 = arith.constant dense<0.000000e+00> : vector<16xf32>
    %21 = vector.multi_reduction <add>, %20, %cst_11 [1] : vector<16x128xf32> to vector<16xf32>
    %22 = vector.shape_cast %21 : vector<16xf32> to vector<16x1xf32>
    %cst_12 = arith.constant 3.125000e-02 : f32
    %23 = vector.broadcast %cst_12 : f32 to vector<16x1xf32>
    %24 = arith.mulf %22, %23 : vector<16x1xf32>
    %25 = arith.mulf %19, %19 : vector<16x1xf32>
    %26 = arith.subf %24, %25 : vector<16x1xf32>
    %cst_13 = arith.constant 0.000000e+00 : f32
    %27 = vector.broadcast %cst_13 : f32 to vector<16x1xf32>
    %28 = arith.maximumf %26, %27 : vector<16x1xf32>
    %29 = vector.broadcast %19 : vector<16x1xf32> to vector<16x128xf32>
    %30 = arith.subf %15, %29 : vector<16x128xf32>
    %cst_14 = arith.constant 9.99999974E-6 : f32
    %31 = vector.broadcast %cst_14 : f32 to vector<16x1xf32>
    %32 = arith.addf %28, %31 : vector<16x1xf32>
    %33 = math.rsqrt %32 : vector<16x1xf32>
    %34 = vector.broadcast %33 : vector<16x1xf32> to vector<16x128xf32>
    %35 = arith.mulf %30, %34 : vector<16x128xf32>
    %36 = vector.broadcast %6 : vector<1x128xf32> to vector<16x128xf32>
    %37 = arith.mulf %35, %36 : vector<16x128xf32>
    %38 = vector.broadcast %7 : vector<1x128xf32> to vector<16x128xf32>
    %39 = arith.addf %37, %38 : vector<16x128xf32>
    %c0_15 = arith.constant 0 : index
    %c0_16 = arith.constant 0 : index
    %40 = vector.load %arg5[%c0_15, %c0_16] : memref<16x128xf32, #tpu.memory_space<vmem>>, vector<16x128xf32>
    tpu.vector_store %arg5[%c0_15, %c0_16], %39 {strides = array<i32>} : memref<16x128xf32, #tpu.memory_space<vmem>>, vector<16x128xf32>,
    return
  }
  func.func @transform_0(%arg0: i32) -> (i32, i32) {
    %c0_i32 = arith.constant 0 : i32
    %c0_i32_0 = arith.constant 0 : i32
    return %arg0, %c0_i32 : i32, i32
  }
  func.func @transform_1(%arg0: i32) -> (i32, i32) {
    %c0_i32 = arith.constant 0 : i32
    %c0_i32_0 = arith.constant 0 : i32
    %c0_i32_1 = arith.constant 0 : i32
    return %c0_i32, %c0_i32_0 : i32, i32
  }
  func.func @transform_2(%arg0: i32) -> (i32, i32) {
    %c0_i32 = arith.constant 0 : i32
    %c0_i32_0 = arith.constant 0 : i32
    %c0_i32_1 = arith.constant 0 : i32
    return %c0_i32, %c0_i32_0 : i32, i32
  }
  func.func @transform_3(%arg0: i32) -> (i32, i32) {
    %c0_i32 = arith.constant 0 : i32
    %c0_i32_0 = arith.constant 0 : i32
    %c0_i32_1 = arith.constant 0 : i32
    return %c0_i32, %c0_i32_0 : i32, i32
  }
  func.func @transform_4(%arg0: i32) -> (i32, i32) {
    %c0_i32 = arith.constant 0 : i32
    %c0_i32_0 = arith.constant 0 : i32
    return %arg0, %c0_i32 : i32, i32
  }
}

module attributes {stable_mosaic.version = 11 : i64} {
  func.func @_ir_cls_kernel(%arg0: i32, %arg1: memref<16x32xf32, #tpu.memory_space<vmem>>, %arg2: memref<32x128xf32, #tpu.memory_space<vmem>>, %arg3: memref<128x128xf32, #tpu.memory_space<vmem>>, %arg4: memref<4x128xf32, #tpu.memory_space<vmem>>, %arg5: memref<16x128xf32, #tpu.memory_space<vmem>>) attributes {dimension_semantics = [#tpu.dimension_semantics<parallel>], iteration_bounds = array<i64: 1>, scalar_prefetch = 0 : i64, scratch_operands = 0 : i64, tpu.core_type = #tpu.core_type<tc>, window_params = [{transform_indices = @transform_0, window_bounds = array<i64: 16, 32>}, {pipeline_mode = #tpu.pipeline_mode<synchronous>, transform_indices = @transform_1, window_bounds = array<i64: 32, 128>}, {pipeline_mode = #tpu.pipeline_mode<synchronous>, transform_indices = @transform_2, window_bounds = array<i64: 128, 128>}, {pipeline_mode = #tpu.pipeline_mode<synchronous>, transform_indices = @transform_3, window_bounds = array<i64: 4, 128>}, {transform_indices = @transform_4, window_bounds = array<i64: 16, 128>}]} {
    %c0 = arith.constant 0 : index
    %c0_0 = arith.constant 0 : index
    %0 = vector.load %arg1[%c0, %c0_0] : memref<16x32xf32, #tpu.memory_space<vmem>>, vector<16x32xf32>
    %c0_1 = arith.constant 0 : index
    %c0_2 = arith.constant 0 : index
    %1 = vector.load %arg2[%c0_1, %c0_2] : memref<32x128xf32, #tpu.memory_space<vmem>>, vector<32x128xf32>
    %c0_3 = arith.constant 0 : index
    %c0_4 = arith.constant 0 : index
    %2 = vector.load %arg3[%c0_3, %c0_4] : memref<128x128xf32, #tpu.memory_space<vmem>>, vector<128x128xf32>
    %c0_5 = arith.constant 0 : index
    %c0_6 = arith.constant 0 : index
    %3 = vector.load %arg4[%c0_5, %c0_6] : memref<4x128xf32, #tpu.memory_space<vmem>>, vector<4x128xf32>
    %4 = vector.extract_strided_slice %3 {offsets = [0, 0], sizes = [1, 128], strides = [1, 1]} : vector<4x128xf32> to vector<1x128xf32>
    %5 = vector.extract_strided_slice %3 {offsets = [1, 0], sizes = [1, 128], strides = [1, 1]} : vector<4x128xf32> to vector<1x128xf32>
    %6 = vector.extract_strided_slice %3 {offsets = [2, 0], sizes = [1, 128], strides = [1, 1]} : vector<4x128xf32> to vector<1x128xf32>
    %7 = vector.extract_strided_slice %3 {offsets = [3, 0], sizes = [1, 128], strides = [1, 1]} : vector<4x128xf32> to vector<1x128xf32>
    %cst = arith.constant dense<0.000000e+00> : vector<16x128xf32>
    %8 = tpu.matmul %0, %1, %cst {dimension_numbers = #tpu.dot_dimension_numbers<[1], [0], [0], [1], [0, 0, 1, 1], [], []>} : vector<16x32xf32>, vector<32x128xf32>, vector<16x128xf32> -> vector<16x128xf32>
    %9 = vector.broadcast %4 : vector<1x128xf32> to vector<16x128xf32>
    %10 = arith.addf %8, %9 : vector<16x128xf32>
    %cst_7 = arith.constant 0.000000e+00 : f32
    %11 = vector.broadcast %cst_7 : f32 to vector<16x128xf32>
    %12 = arith.maximumf %10, %11 : vector<16x128xf32>
    %cst_8 = arith.constant dense<0.000000e+00> : vector<16x128xf32>
    %13 = tpu.matmul %12, %2, %cst_8 {dimension_numbers = #tpu.dot_dimension_numbers<[1], [0], [0], [1], [0, 0, 1, 1], [], []>} : vector<16x128xf32>, vector<128x128xf32>, vector<16x128xf32> -> vector<16x128xf32>
    %14 = vector.broadcast %5 : vector<1x128xf32> to vector<16x128xf32>
    %15 = arith.addf %13, %14 : vector<16x128xf32>
    %cst_9 = arith.constant dense<0.000000e+00> : vector<16xf32>
    %16 = vector.multi_reduction <add>, %15, %cst_9 [1] : vector<16x128xf32> to vector<16xf32>
    %17 = vector.shape_cast %16 : vector<16xf32> to vector<16x1xf32>
    %cst_10 = arith.constant 3.125000e-02 : f32
    %18 = vector.broadcast %cst_10 : f32 to vector<16x1xf32>
    %19 = arith.mulf %17, %18 : vector<16x1xf32>
    %20 = arith.mulf %15, %15 : vector<16x128xf32>
    %cst_11 = arith.constant dense<0.000000e+00> : vector<16xf32>
    %21 = vector.multi_reduction <add>, %20, %cst_11 [1] : vector<16x128xf32> to vector<16xf32>
    %22 = vector.shape_cast %21 : vector<16xf32> to vector<16x1xf32>
    %cst_12 = arith.constant 3.125000e-02 : f32
    %23 = vector.broadcast %cst_12 : f32 to vector<16x1xf32>
    %24 = arith.mulf %22, %23 : vector<16x1xf32>
    %25 = arith.mulf %19, %19 : vector<16x1xf32>
    %26 = arith.subf %24, %25 : vector<16x1xf32>
    %cst_13 = arith.constant 0.000000e+00 : f32
    %27 = vector.broadcast %cst_13 : f32 to vector<16x1xf32>
    %28 = arith.maximumf %26, %27 : vector<16x1xf32>
    %29 = vector.broadcast %19 : vector<16x1xf32> to vector<16x128xf32>
    %30 = arith.subf %15, %29 : vector<16x128xf32>
    %cst_14 = arith.constant 9.99999974E-6 : f32
    %31 = vector.broadcast %cst_14 : f32 to vector<16x1xf32>
    %32 = arith.addf %28, %31 : vector<16x1xf32>
    %33 = math.rsqrt %32 : vector<16x1xf32>
    %34 = vector.broadcast %33 : vector<16x1xf32> to vector<16x128xf32>
    %35 = arith.mulf %30, %34 : vector<16x128xf32>
    %36 = vector.broadcast %6 : vector<1x128xf32> to vector<16x128xf32>
    %37 = arith.mulf %35, %36 : vector<16x128xf32>
    %38 = vector.broadcast %7 : vector<1x128xf32> to vector<16x128xf32>
    %39 = arith.addf %37, %38 : vector<16x128xf32>
    %c0_15 = arith.constant 0 : index
    %c0_16 = arith.constant 0 : index
    %40 = vector.load %arg5[%c0_15, %c0_16] : memref<16x128xf32, #tpu.memory_space<vmem>>, vector<16x128xf32>
    tpu.vector_store %arg5[%c0_15, %c0_16], %39 {strides = array<i32>} : memref<16x128xf32, #tpu.memory_space<vmem>>, vector<16x128xf32>,
    return
  }
  func.func @transform_0(%arg0: i32) -> (i32, i32) {
    %c0_i32 = arith.constant 0 : i32
    %c0_i32_0 = arith.constant 0 : i32
    return %arg0, %c0_i32 : i32, i32
  }
  func.func @transform_1(%arg0: i32) -> (i32, i32) {
    %c0_i32 = arith.constant 0 : i32
    %c0_i32_0 = arith.constant 0 : i32
    %c0_i32_1 = arith.constant 0 : i32
    return %c0_i32, %c0_i32_0 : i32, i32
  }
  func.func @transform_2(%arg0: i32) -> (i32, i32) {
    %c0_i32 = arith.constant 0 : i32
    %c0_i32_0 = arith.constant 0 : i32
    %c0_i32_1 = arith.constant 0 : i32
    return %c0_i32, %c0_i32_0 : i32, i32
  }
  func.func @transform_3(%arg0: i32) -> (i32, i32) {
    %c0_i32 = arith.constant 0 : i32
    %c0_i32_0 = arith.constant 0 : i32
    %c0_i32_1 = arith.constant 0 : i32
    return %c0_i32, %c0_i32_0 : i32, i32
  }
  func.func @transform_4(%arg0: i32) -> (i32, i32) {
    %c0_i32 = arith.constant 0 : i32
    %c0_i32_0 = arith.constant 0 : i32
    return %arg0, %c0_i32 : i32, i32
  }
}

</mosaic_0001>

<bundles_post_ra>
// kernel: tpu_custom_call.1
= control target key start
LH: loop header
LB: loop body
LE: loop exit
PB: predicated region body
PF: predicated region fallthrough
CT: control target
= control target key end

     0   :  { %9 = vsyncpa [#allocation3], 0  ;;  %s537_s0 = inlined_call_operand.hbm [shape: f32[16,32], index: 0, kind: input, shape index: {}]   ;;  %s538_s1 = inlined_call_operand.hbm [shape: f32[32,128], index: 1, kind: input, shape index: {}]   ;;  %s539_s2 = inlined_call_operand.hbm [shape: f32[128,128], index: 2, kind: input, shape index: {}]   ;;  %s540_s3 = inlined_call_operand.vmem [shape: f32[4,128], index: 3, kind: input, shape index: {}]   ;;  %s541_s4 = inlined_call_operand.hbm [shape: f32[16,128], index: 4, kind: output, shape index: {}]  }
   0x1   :  { %10 = vsyncpa [#allocation6], 0 }
   0x2   :  { %11 = vsyncpa [#allocation4], 0  ;;  %s477_s15 = smov [#allocation5]   ;;  %s478_s17 = smov [#allocation2]  }
   0x3   :  { %s29_s16 = sshll.u32 %s477_s15, 4  ;;  %s17_s18 = sshll.u32 %s478_s17, 4  ;;  %s30_s16 = int_to_ptr.vmem [resolvable:$true] %s29_s16  ;;  %s18_s18 = int_to_ptr.vmem [resolvable:$true] %s17_s18 }
   0x4   :  { %s399_s19 = scalar_lea.vmem %s30_s16, 512  ;;  %p404_p1 = scmp.lt.s32.totalorder %s30_s16, %s30_s16 }
   0x5   :  { %p400_p0 = scmp.ne.s32.totalorder %s30_s16, %s399_s19  ;;  %p405_p2 = scmp.lt.s32.totalorder %s399_s19, %s399_s19 }
   0x7   :  { %p406_p3 = por %p405_p2, %p404_p1 }
   0x9   :  { %p407_p4 = pnand %p406_p3, %p400_p0 }
   0xb   :  { %410 = shalt.err (!%p407_p4)
}
   0xc   :  { %s479_s20 = smov 128   ;;  %s480_s21 = smov 8  }
   0xd   :  { %35 = dma.hbm_to_vmem [thread:$0]  %s538_s1, 512, %s30_s16, [#allocation6], %s479_s20, %s479_s20, %s480_s21  }
   0xe   :  { %s419_s24 = scalar_lea.vmem %s18_s18, 256  ;;  %p424_p6 = scmp.lt.s32.totalorder %s18_s18, %s18_s18 }
   0xf   :  { %p420_p5 = scmp.ne.s32.totalorder %s18_s18, %s419_s24  ;;  %p425_p7 = scmp.lt.s32.totalorder %s419_s24, %s419_s24 }
  0x11   :  { %p426_p8 = por %p425_p7, %p424_p6 }
  0x13   :  { %p427_p9 = pnand %p426_p8, %p420_p5 }
  0x15   :  { %430 = shalt.err (!%p427_p9)
}
  0x16   :  { %23 = dma.hbm_to_vmem [thread:$0]  %s537_s0, 256, %s18_s18, [#allocation3], %s479_s20, %s479_s20, %s480_s21  }
  0x17   :  { %s481_s27 = smov [#allocation7]  }
  0x18   :  { %s41_s28 = sshll.u32 %s481_s27, 4  ;;  %s42_s28 = int_to_ptr.vmem [resolvable:$true] %s41_s28 }
  0x19   :  { %s439_s29 = scalar_lea.vmem %s42_s28, 2048  ;;  %p444_p11 = scmp.lt.s32.totalorder %s42_s28, %s42_s28 }
  0x1a   :  { %p440_p10 = scmp.ne.s32.totalorder %s42_s28, %s439_s29  ;;  %p445_p12 = scmp.lt.s32.totalorder %s439_s29, %s439_s29 }
  0x1c   :  { %p446_p13 = por %p445_p12, %p444_p11 }
  0x1e   :  { %p447_p0 = pnand %p446_p13, %p440_p10 }
  0x20   :  { %450 = shalt.err (!%p447_p0)
}
  0x21   :  { %47 = dma.hbm_to_vmem [thread:$0]  %s539_s2, 2048, %s42_s28, [#allocation6], %s479_s20, %s479_s20, %s480_s21  }
  0x22   :  { %471 = dma.done.wait [#allocation3], 256  }
  0x23   :  { %472 = vsyncadd [#allocation3], 4294967040 }
  0x24   :  { %473 = dma.done.wait [#allocation6], 2560  }
  0x25   :  { %474 = vsyncadd [#allocation6], 4294964736  ;;  %vm86_vm0 = vcmask 261120   ;;  %v64_v0 = vld [vmem:[#allocation5 + $0x18] sm:$0xff]  ;;  %v63_v1 = vld [vmem:[#allocation5 + $0x10] sm:$0xff]  ;;  %v82_v22 = vlaneseq }
  0x26   :  { %335 = vmatprep.subr.mxu0 %v64_v0  ;;  %v59_v2 = vld [vmem:[#allocation2] sm:$0xff]  ;;  %v62_v3 = vld [vmem:[#allocation5 + $0x8] sm:$0xff]  ;;  %v80_v4 = vld [vmem:[#allocation7 + $0x78] sm:$0xff] }
  0x27   :  { %336 = vmatpush3.msra.mxu0 %v64_v0  ;;  %343 = vmatprep.mubr.msk.f32.mxu0 %vm86_vm0, %v59_v2  ;;  %v79_v5 = vld [vmem:[#allocation7 + $0x70] sm:$0xff]  ;;  %v61_v6 = vld [vmem:[#allocation5] sm:$0xff]  ;;  %v78_v7 = vld [vmem:[#allocation7 + $0x68] sm:$0xff]  ;;  %v83_v23 = vshrl.u32 %v82_v22, 7 }
  0x28   :  { %337 = vmatprep.subr.mxu0 %v63_v1  ;;  %346 = vmatprep.subr.mxu1 %v80_v4  ;;  %v60_v8 = vld [vmem:[#allocation2 + $0x8] sm:$0xff]  ;;  %v77_v9 = vld [vmem:[#allocation7 + $0x60] sm:$0xff]  ;;  %v75_v11 = vld [vmem:[#allocation7 + $0x50] sm:$0xff] }
  0x29   :  { %338 = vmatpush3.msra.mxu0 %v63_v1  ;;  %347 = vmatpush3.msra.mxu1 %v80_v4  ;;  %v76_v10 = vld [vmem:[#allocation7 + $0x58] sm:$0xff]  ;;  %v74_v12 = vld [vmem:[#allocation7 + $0x48] sm:$0xff]  ;;  %v73_v13 = vld [vmem:[#allocation7 + $0x40] sm:$0xff]  ;;  %v84_v24 = vsub.s32 0, %v83_v23  ;;  %v172_v33 = vsub.s32 1, %v83_v23  ;;  %v279_v57 = vsub.s32 2, %v83_v23 }
  0x2a   :  { %339 = vmatprep.subr.mxu0 %v62_v3  ;;  %348 = vmatprep.subr.mxu1 %v79_v5  ;;  %v72_v14 = vld [vmem:[#allocation7 + $0x38] sm:$0xff]  ;;  %v71_v15 = vld [vmem:[#allocation7 + $0x30] sm:$0xff]  ;;  %v70_v16 = vld [vmem:[#allocation7 + $0x28] sm:$0xff]  ;;  %v285_v58 = vsub.s32 3, %v83_v23 }
  0x2b   :  { %340 = vmatpush3.msra.mxu0 %v62_v3  ;;  %349 = vmatpush3.msra.mxu1 %v79_v5  ;;  %v69_v17 = vld [vmem:[#allocation7 + $0x20] sm:$0xff]  ;;  %v68_v18 = vld [vmem:[#allocation7 + $0x18] sm:$0xff]  ;;  %v67_v19 = vld [vmem:[#allocation7 + $0x10] sm:$0xff] }
  0x2c   :  { %341 = vmatprep.subr.mxu0 %v61_v6  ;;  %350 = vmatprep.subr.mxu1 %v78_v7  ;;  %v66_v20 = vld [vmem:[#allocation7 + $0x8] sm:$0xff]  ;;  %v65_v21 = vld [vmem:[#allocation7] sm:$0xff]  ;;  %v81_v25 = vld [vmem:[%s540_s3] sm:$0xf]  ;;  %s482_s3 = smov [#allocation8]  }
  0x2d   :  { %342 = vmatpush3.msra.mxu0 %v61_v6  ;;  %351 = vmatpush3.msra.mxu1 %v78_v7  ;;  %v85_v26 = vrot.slane %v81_v25, %v84_v24  ;;  %v173_v35 = vrot.slane %v81_v25, %v172_v33  ;;  %v280_v60 = vrot.slane %v81_v25, %v279_v57  ;;  %s296_s5 = sshll.u32 %s482_s3, 4  ;;  %s297_s5 = int_to_ptr.vmem [resolvable:$true] %s296_s5 }
  0x2e   :  { %344 = vmatmul.mubr.msk.f32.vlgmr.msra.gmra.mxu0 %vm86_vm0, %v60_v8  ;;  %352 = vmatprep.subr.mxu1 %v77_v9  ;;  %v286_v63 = vrot.slane %v81_v25, %v285_v58  ;;  %s451_s6 = scalar_lea.vmem %s297_s5, 256  ;;  %p456_p2 = scmp.lt.s32.totalorder %s297_s5, %s297_s5 }
  0x2f   :  { %353 = vmatpush3.msra.mxu1 %v77_v9  ;;  %p452_p1 = scmp.ne.s32.totalorder %s297_s5, %s451_s6  ;;  %p457_p3 = scmp.lt.s32.totalorder %s451_s6, %s451_s6 }
  0x30   :  { %354 = vmatprep.subr.mxu1 %v76_v10 }
  0x31   :  { %355 = vmatpush3.msra.mxu1 %v76_v10  ;;  %p458_p4 = por %p457_p3, %p456_p2 }
  0x32   :  { %356 = vmatprep.subr.mxu1 %v75_v11 }
  0x33   :  { %357 = vmatpush3.msra.mxu1 %v75_v11  ;;  %p459_p5 = pnand %p458_p4, %p452_p1 }
  0x34   :  { %358 = vmatprep.subr.mxu1 %v74_v12 }
  0x35   :  { %359 = vmatpush3.msra.mxu1 %v74_v12 }
  0x36   :  { %360 = vmatprep.subr.mxu1 %v73_v13 }
  0x37   :  { %361 = vmatpush3.msra.mxu1 %v73_v13 }
  0x38   :  { %362 = vmatprep.subr.mxu1 %v72_v14 }
  0x39   :  { %363 = vmatpush3.msra.mxu1 %v72_v14 }
  0x3a   :  { %364 = vmatprep.subr.mxu1 %v71_v15 }
  0x3b   :  { %365 = vmatpush3.msra.mxu1 %v71_v15 }
  0x3c   :  { %366 = vmatprep.subr.mxu1 %v70_v16 }
  0x3d   :  { %367 = vmatpush3.msra.mxu1 %v70_v16 }
  0x3e   :  { %368 = vmatprep.subr.mxu1 %v69_v17 }
  0x3f   :  { %369 = vmatpush3.msra.mxu1 %v69_v17 }
  0x40   :  { %370 = vmatprep.subr.mxu1 %v68_v18 }
  0x41   :  { %371 = vmatpush3.msra.mxu1 %v68_v18 }
  0x42   :  { %372 = vmatprep.subr.mxu1 %v67_v19 }
  0x43   :  { %373 = vmatpush3.msra.mxu1 %v67_v19 }
  0x44   :  { %374 = vmatprep.subr.mxu1 %v66_v20 }
  0x45   :  { %375 = vmatpush3.msra.mxu1 %v66_v20 }
  0x46   :  { %376 = vmatprep.subr.mxu1 %v65_v21 }
  0x47   :  { %377 = vmatpush3.msra.mxu1 %v65_v21 }
  0xee   :  { %v345_v27 = vpop.f32.mrf.mxu0 }
  0xef   :  { %v165_v28 = vadd.f32 %v345_v27, %v85_v26 }
  0xf0   :  { %v159_v29 = vpop.f32.mrf.mxu0 }
  0xf1   :  { %v160_v30 = vadd.f32 %v159_v29, %v85_v26  ;;  %v169_v32 = vmax.f32 %v165_v28, 0.0 }
  0xf3   :  { %v168_v31 = vmax.f32 %v160_v30, 0.0 }
  0xf5   :  { %378 = vmatprep.mubr.f32.mxu1 %v168_v31 }
  0xf6   :  { %379 = vmatmul.mubr.f32.vlgmr.msra.gmra.mxu1 %v169_v32 }
 0x1b6   :  { %v380_v34 = vpop.f32.mrf.mxu1 }
 0x1b7   :  { %v246_v38 = vadd.f32 %v380_v34, %v173_v35 }
 0x1b8   :  { %v240_v36 = vpop.f32.mrf.mxu1 }
 0x1b9   :  { %v241_v37 = vadd.f32 %v240_v36, %v173_v35  ;;  %v256_v40 = vmul.f32 %v246_v38, %v246_v38 }
 0x1bb   :  { %249 = vadd.xlane.f32.xlu0 %v241_v37  ;;  %v255_v39 = vmul.f32 %v241_v37, %v241_v37 }
 0x1bd   :  { %257 = vadd.xlane.f32.xlu1 %v255_v39 }
 0x1bf   :  { %251 = vadd.xlane.f32.xlu0 %v246_v38 }
 0x1c1   :  { %259 = vadd.xlane.f32.xlu1 %v256_v40 }
 0x244   :  { %v250_v41 = vpop.xlane.xlu0 %249 }
 0x245   :  { %v253_v42 = vmul.f32 0.03125, %v250_v41 }
 0x246   :  { %v258_v43 = vpop.xlane.xlu1 %257 }
 0x247   :  { %v263_v44 = vmul.f32 %v253_v42, %v253_v42  ;;  %v261_v45 = vmul.f32 0.03125, %v258_v43  ;;  %v269_v59 = vsub.f32 %v241_v37, %v253_v42 }
 0x248   :  { %v252_v46 = vpop.xlane.xlu0 %251 }
 0x249   :  { %v265_v47 = vsub.f32 %v261_v45, %v263_v44  ;;  %v254_v48 = vmul.f32 0.03125, %v252_v46 }
 0x24a   :  { %v260_v49 = vpop.xlane.xlu1 %259 }
 0x24b   :  { %v267_v50 = vmax.f32 %v265_v47, 0.0  ;;  %v264_v51 = vmul.f32 %v254_v48, %v254_v48  ;;  %v262_v52 = vmul.f32 0.03125, %v260_v49  ;;  %v270_v0 = vsub.f32 %v246_v38, %v254_v48 }
 0x24d   :  { %v271_v53 = vadd.f32 1e-05, %v267_v50  ;;  %v266_v54 = vsub.f32 %v262_v52, %v264_v51 }
 0x24f   :  { %387 = vrsqrt.f32 %v271_v53  ;;  %v268_v55 = vmax.f32 %v266_v54, 0.0 }
 0x251   :  { %v272_v56 = vadd.f32 1e-05, %v268_v55 }
 0x253   :  { %389 = vrsqrt.f32 %v272_v56 }
 0x25c   :  { %v388_v61 = vpop.eup %387 }
 0x25d   :  { %v275_v62 = vmul.f32 %v388_v61, %v269_v59 }
 0x25f   :  { %v281_v1 = vmul.f32 %v280_v60, %v275_v62 }
 0x260   :  { %v390_v2 = vpop.eup %389 }
 0x261   :  { %v276_v3 = vmul.f32 %v390_v2, %v270_v0  ;;  %v287_v4 = vadd.f32 %v286_v63, %v281_v1 }
 0x263   :  { %v282_v5 = vmul.f32 %v280_v60, %v276_v3  ;;  %289 = vst [vmem:[#allocation8] sm:$0xff] %v287_v4 }
 0x265   :  { %v288_v6 = vadd.f32 %v286_v63, %v282_v5 }
 0x267   :  { %290 = vst [vmem:[#allocation8 + $0x8] sm:$0xff] %v288_v6 }
 0x268   :  { %462 = shalt.err (!%p459_p5)
}
 0x269   :  { %302 = dma.vmem_to_hbm [thread:$0]  %s297_s5, 256, %s541_s4, [#allocation4], %s479_s20, %s479_s20, %s480_s21  }
 0x26a   :  { %475 = dma.done.wait [#allocation4], 256  }
 0x26b   :  { %476 = vsyncadd [#allocation4], 4294967040 }
 0x26c   :  { %306 = vsyncpa [#allocation3], 1 }
 0x26d   :  { %307 = vsyncpa [#allocation6], 1 }
 0x26e   :  { %308 = vsyncpa [#allocation4], 1 }

// kernel: tpu_custom_call.1
= control target key start
LH: loop header
LB: loop body
LE: loop exit
PB: predicated region body
PF: predicated region fallthrough
CT: control target
= control target key end

     0   :  { %9 = vsyncpa [#allocation3], 0  ;;  %s537_s0 = inlined_call_operand.hbm [shape: f32[16,32], index: 0, kind: input, shape index: {}]   ;;  %s538_s1 = inlined_call_operand.hbm [shape: f32[32,128], index: 1, kind: input, shape index: {}]   ;;  %s539_s2 = inlined_call_operand.hbm [shape: f32[128,128], index: 2, kind: input, shape index: {}]   ;;  %s540_s3 = inlined_call_operand.vmem [shape: f32[4,128], index: 3, kind: input, shape index: {}]   ;;  %s541_s4 = inlined_call_operand.hbm [shape: f32[16,128], index: 4, kind: output, shape index: {}]  }
   0x1   :  { %10 = vsyncpa [#allocation6], 0 }
   0x2   :  { %11 = vsyncpa [#allocation4], 0  ;;  %s477_s15 = smov [#allocation5]   ;;  %s478_s17 = smov [#allocation2]  }
   0x3   :  { %s29_s16 = sshll.u32 %s477_s15, 4  ;;  %s17_s18 = sshll.u32 %s478_s17, 4  ;;  %s30_s16 = int_to_ptr.vmem [resolvable:$true] %s29_s16  ;;  %s18_s18 = int_to_ptr.vmem [resolvable:$true] %s17_s18 }
   0x4   :  { %s399_s19 = scalar_lea.vmem %s30_s16, 512  ;;  %p404_p1 = scmp.lt.s32.totalorder %s30_s16, %s30_s16 }
   0x5   :  { %p400_p0 = scmp.ne.s32.totalorder %s30_s16, %s399_s19  ;;  %p405_p2 = scmp.lt.s32.totalorder %s399_s19, %s399_s19 }
   0x7   :  { %p406_p3 = por %p405_p2, %p404_p1 }
   0x9   :  { %p407_p4 = pnand %p406_p3, %p400_p0 }
   0xb   :  { %410 = shalt.err (!%p407_p4)
}
   0xc   :  { %s479_s20 = smov 128   ;;  %s480_s21 = smov 8  }
   0xd   :  { %35 = dma.hbm_to_vmem [thread:$0]  %s538_s1, 512, %s30_s16, [#allocation6], %s479_s20, %s479_s20, %s480_s21  }
   0xe   :  { %s419_s24 = scalar_lea.vmem %s18_s18, 256  ;;  %p424_p6 = scmp.lt.s32.totalorder %s18_s18, %s18_s18 }
   0xf   :  { %p420_p5 = scmp.ne.s32.totalorder %s18_s18, %s419_s24  ;;  %p425_p7 = scmp.lt.s32.totalorder %s419_s24, %s419_s24 }
  0x11   :  { %p426_p8 = por %p425_p7, %p424_p6 }
  0x13   :  { %p427_p9 = pnand %p426_p8, %p420_p5 }
  0x15   :  { %430 = shalt.err (!%p427_p9)
}
  0x16   :  { %23 = dma.hbm_to_vmem [thread:$0]  %s537_s0, 256, %s18_s18, [#allocation3], %s479_s20, %s479_s20, %s480_s21  }
  0x17   :  { %s481_s27 = smov [#allocation7]  }
  0x18   :  { %s41_s28 = sshll.u32 %s481_s27, 4  ;;  %s42_s28 = int_to_ptr.vmem [resolvable:$true] %s41_s28 }
  0x19   :  { %s439_s29 = scalar_lea.vmem %s42_s28, 2048  ;;  %p444_p11 = scmp.lt.s32.totalorder %s42_s28, %s42_s28 }
  0x1a   :  { %p440_p10 = scmp.ne.s32.totalorder %s42_s28, %s439_s29  ;;  %p445_p12 = scmp.lt.s32.totalorder %s439_s29, %s439_s29 }
  0x1c   :  { %p446_p13 = por %p445_p12, %p444_p11 }
  0x1e   :  { %p447_p0 = pnand %p446_p13, %p440_p10 }
  0x20   :  { %450 = shalt.err (!%p447_p0)
}
  0x21   :  { %47 = dma.hbm_to_vmem [thread:$0]  %s539_s2, 2048, %s42_s28, [#allocation6], %s479_s20, %s479_s20, %s480_s21  }
  0x22   :  { %471 = dma.done.wait [#allocation3], 256  }
  0x23   :  { %472 = vsyncadd [#allocation3], 4294967040 }
  0x24   :  { %473 = dma.done.wait [#allocation6], 2560  }
  0x25   :  { %474 = vsyncadd [#allocation6], 4294964736  ;;  %vm86_vm0 = vcmask 261120   ;;  %v64_v0 = vld [vmem:[#allocation5 + $0x18] sm:$0xff]  ;;  %v63_v1 = vld [vmem:[#allocation5 + $0x10] sm:$0xff]  ;;  %v82_v22 = vlaneseq }
  0x26   :  { %335 = vmatprep.subr.mxu0 %v64_v0  ;;  %v59_v2 = vld [vmem:[#allocation2] sm:$0xff]  ;;  %v62_v3 = vld [vmem:[#allocation5 + $0x8] sm:$0xff]  ;;  %v80_v4 = vld [vmem:[#allocation7 + $0x78] sm:$0xff] }
  0x27   :  { %336 = vmatpush3.msra.mxu0 %v64_v0  ;;  %343 = vmatprep.mubr.msk.f32.mxu0 %vm86_vm0, %v59_v2  ;;  %v79_v5 = vld [vmem:[#allocation7 + $0x70] sm:$0xff]  ;;  %v61_v6 = vld [vmem:[#allocation5] sm:$0xff]  ;;  %v78_v7 = vld [vmem:[#allocation7 + $0x68] sm:$0xff]  ;;  %v83_v23 = vshrl.u32 %v82_v22, 7 }
  0x28   :  { %337 = vmatprep.subr.mxu0 %v63_v1  ;;  %346 = vmatprep.subr.mxu1 %v80_v4  ;;  %v60_v8 = vld [vmem:[#allocation2 + $0x8] sm:$0xff]  ;;  %v77_v9 = vld [vmem:[#allocation7 + $0x60] sm:$0xff]  ;;  %v75_v11 = vld [vmem:[#allocation7 + $0x50] sm:$0xff] }
  0x29   :  { %338 = vmatpush3.msra.mxu0 %v63_v1  ;;  %347 = vmatpush3.msra.mxu1 %v80_v4  ;;  %v76_v10 = vld [vmem:[#allocation7 + $0x58] sm:$0xff]  ;;  %v74_v12 = vld [vmem:[#allocation7 + $0x48] sm:$0xff]  ;;  %v73_v13 = vld [vmem:[#allocation7 + $0x40] sm:$0xff]  ;;  %v84_v24 = vsub.s32 0, %v83_v23  ;;  %v172_v33 = vsub.s32 1, %v83_v23  ;;  %v279_v57 = vsub.s32 2, %v83_v23 }
  0x2a   :  { %339 = vmatprep.subr.mxu0 %v62_v3  ;;  %348 = vmatprep.subr.mxu1 %v79_v5  ;;  %v72_v14 = vld [vmem:[#allocation7 + $0x38] sm:$0xff]  ;;  %v71_v15 = vld [vmem:[#allocation7 + $0x30] sm:$0xff]  ;;  %v70_v16 = vld [vmem:[#allocation7 + $0x28] sm:$0xff]  ;;  %v285_v58 = vsub.s32 3, %v83_v23 }
  0x2b   :  { %340 = vmatpush3.msra.mxu0 %v62_v3  ;;  %349 = vmatpush3.msra.mxu1 %v79_v5  ;;  %v69_v17 = vld [vmem:[#allocation7 + $0x20] sm:$0xff]  ;;  %v68_v18 = vld [vmem:[#allocation7 + $0x18] sm:$0xff]  ;;  %v67_v19 = vld [vmem:[#allocation7 + $0x10] sm:$0xff] }
  0x2c   :  { %341 = vmatprep.subr.mxu0 %v61_v6  ;;  %350 = vmatprep.subr.mxu1 %v78_v7  ;;  %v66_v20 = vld [vmem:[#allocation7 + $0x8] sm:$0xff]  ;;  %v65_v21 = vld [vmem:[#allocation7] sm:$0xff]  ;;  %v81_v25 = vld [vmem:[%s540_s3] sm:$0xf]  ;;  %s482_s3 = smov [#allocation8]  }
  0x2d   :  { %342 = vmatpush3.msra.mxu0 %v61_v6  ;;  %351 = vmatpush3.msra.mxu1 %v78_v7  ;;  %v85_v26 = vrot.slane %v81_v25, %v84_v24  ;;  %v173_v35 = vrot.slane %v81_v25, %v172_v33  ;;  %v280_v60 = vrot.slane %v81_v25, %v279_v57  ;;  %s296_s5 = sshll.u32 %s482_s3, 4  ;;  %s297_s5 = int_to_ptr.vmem [resolvable:$true] %s296_s5 }
  0x2e   :  { %344 = vmatmul.mubr.msk.f32.vlgmr.msra.gmra.mxu0 %vm86_vm0, %v60_v8  ;;  %352 = vmatprep.subr.mxu1 %v77_v9  ;;  %v286_v63 = vrot.slane %v81_v25, %v285_v58  ;;  %s451_s6 = scalar_lea.vmem %s297_s5, 256  ;;  %p456_p2 = scmp.lt.s32.totalorder %s297_s5, %s297_s5 }
  0x2f   :  { %353 = vmatpush3.msra.mxu1 %v77_v9  ;;  %p452_p1 = scmp.ne.s32.totalorder %s297_s5, %s451_s6  ;;  %p457_p3 = scmp.lt.s32.totalorder %s451_s6, %s451_s6 }
  0x30   :  { %354 = vmatprep.subr.mxu1 %v76_v10 }
  0x31   :  { %355 = vmatpush3.msra.mxu1 %v76_v10  ;;  %p458_p4 = por %p457_p3, %p456_p2 }
  0x32   :  { %356 = vmatprep.subr.mxu1 %v75_v11 }
  0x33   :  { %357 = vmatpush3.msra.mxu1 %v75_v11  ;;  %p459_p5 = pnand %p458_p4, %p452_p1 }
  0x34   :  { %358 = vmatprep.subr.mxu1 %v74_v12 }
  0x35   :  { %359 = vmatpush3.msra.mxu1 %v74_v12 }
  0x36   :  { %360 = vmatprep.subr.mxu1 %v73_v13 }
  0x37   :  { %361 = vmatpush3.msra.mxu1 %v73_v13 }
  0x38   :  { %362 = vmatprep.subr.mxu1 %v72_v14 }
  0x39   :  { %363 = vmatpush3.msra.mxu1 %v72_v14 }
  0x3a   :  { %364 = vmatprep.subr.mxu1 %v71_v15 }
  0x3b   :  { %365 = vmatpush3.msra.mxu1 %v71_v15 }
  0x3c   :  { %366 = vmatprep.subr.mxu1 %v70_v16 }
  0x3d   :  { %367 = vmatpush3.msra.mxu1 %v70_v16 }
  0x3e   :  { %368 = vmatprep.subr.mxu1 %v69_v17 }
  0x3f   :  { %369 = vmatpush3.msra.mxu1 %v69_v17 }
  0x40   :  { %370 = vmatprep.subr.mxu1 %v68_v18 }
  0x41   :  { %371 = vmatpush3.msra.mxu1 %v68_v18 }
  0x42   :  { %372 = vmatprep.subr.mxu1 %v67_v19 }
  0x43   :  { %373 = vmatpush3.msra.mxu1 %v67_v19 }
  0x44   :  { %374 = vmatprep.subr.mxu1 %v66_v20 }
  0x45   :  { %375 = vmatpush3.msra.mxu1 %v66_v20 }
  0x46   :  { %376 = vmatprep.subr.mxu1 %v65_v21 }
  0x47   :  { %377 = vmatpush3.msra.mxu1 %v65_v21 }
  0xee   :  { %v345_v27 = vpop.f32.mrf.mxu0 }
  0xef   :  { %v165_v28 = vadd.f32 %v345_v27, %v85_v26 }
  0xf0   :  { %v159_v29 = vpop.f32.mrf.mxu0 }
  0xf1   :  { %v160_v30 = vadd.f32 %v159_v29, %v85_v26  ;;  %v169_v32 = vmax.f32 %v165_v28, 0.0 }
  0xf3   :  { %v168_v31 = vmax.f32 %v160_v30, 0.0 }
  0xf5   :  { %378 = vmatprep.mubr.f32.mxu1 %v168_v31 }
  0xf6   :  { %379 = vmatmul.mubr.f32.vlgmr.msra.gmra.mxu1 %v169_v32 }
 0x1b6   :  { %v380_v34 = vpop.f32.mrf.mxu1 }
 0x1b7   :  { %v246_v38 = vadd.f32 %v380_v34, %v173_v35 }
 0x1b8   :  { %v240_v36 = vpop.f32.mrf.mxu1 }
 0x1b9   :  { %v241_v37 = vadd.f32 %v240_v36, %v173_v35  ;;  %v256_v40 = vmul.f32 %v246_v38, %v246_v38 }
 0x1bb   :  { %249 = vadd.xlane.f32.xlu0 %v241_v37  ;;  %v255_v39 = vmul.f32 %v241_v37, %v241_v37 }
 0x1bd   :  { %257 = vadd.xlane.f32.xlu1 %v255_v39 }
 0x1bf   :  { %251 = vadd.xlane.f32.xlu0 %v246_v38 }
 0x1c1   :  { %259 = vadd.xlane.f32.xlu1 %v256_v40 }
 0x244   :  { %v250_v41 = vpop.xlane.xlu0 %249 }
 0x245   :  { %v253_v42 = vmul.f32 0.03125, %v250_v41 }
 0x246   :  { %v258_v43 = vpop.xlane.xlu1 %257 }
 0x247   :  { %v263_v44 = vmul.f32 %v253_v42, %v253_v42  ;;  %v261_v45 = vmul.f32 0.03125, %v258_v43  ;;  %v269_v59 = vsub.f32 %v241_v37, %v253_v42 }
 0x248   :  { %v252_v46 = vpop.xlane.xlu0 %251 }
 0x249   :  { %v265_v47 = vsub.f32 %v261_v45, %v263_v44  ;;  %v254_v48 = vmul.f32 0.03125, %v252_v46 }
 0x24a   :  { %v260_v49 = vpop.xlane.xlu1 %259 }
 0x24b   :  { %v267_v50 = vmax.f32 %v265_v47, 0.0  ;;  %v264_v51 = vmul.f32 %v254_v48, %v254_v48  ;;  %v262_v52 = vmul.f32 0.03125, %v260_v49  ;;  %v270_v0 = vsub.f32 %v246_v38, %v254_v48 }
 0x24d   :  { %v271_v53 = vadd.f32 1e-05, %v267_v50  ;;  %v266_v54 = vsub.f32 %v262_v52, %v264_v51 }
 0x24f   :  { %387 = vrsqrt.f32 %v271_v53  ;;  %v268_v55 = vmax.f32 %v266_v54, 0.0 }
 0x251   :  { %v272_v56 = vadd.f32 1e-05, %v268_v55 }
 0x253   :  { %389 = vrsqrt.f32 %v272_v56 }
 0x25c   :  { %v388_v61 = vpop.eup %387 }
 0x25d   :  { %v275_v62 = vmul.f32 %v388_v61, %v269_v59 }
 0x25f   :  { %v281_v1 = vmul.f32 %v280_v60, %v275_v62 }
 0x260   :  { %v390_v2 = vpop.eup %389 }
 0x261   :  { %v276_v3 = vmul.f32 %v390_v2, %v270_v0  ;;  %v287_v4 = vadd.f32 %v286_v63, %v281_v1 }
 0x263   :  { %v282_v5 = vmul.f32 %v280_v60, %v276_v3  ;;  %289 = vst [vmem:[#allocation8] sm:$0xff] %v287_v4 }
 0x265   :  { %v288_v6 = vadd.f32 %v286_v63, %v282_v5 }
 0x267   :  { %290 = vst [vmem:[#allocation8 + $0x8] sm:$0xff] %v288_v6 }
 0x268   :  { %462 = shalt.err (!%p459_p5)
}
 0x269   :  { %302 = dma.vmem_to_hbm [thread:$0]  %s297_s5, 256, %s541_s4, [#allocation4], %s479_s20, %s479_s20, %s480_s21  }
 0x26a   :  { %475 = dma.done.wait [#allocation4], 256  }
 0x26b   :  { %476 = vsyncadd [#allocation4], 4294967040 }
 0x26c   :  { %306 = vsyncpa [#allocation3], 1 }
 0x26d   :  { %307 = vsyncpa [#allocation6], 1 }
 0x26e   :  { %308 = vsyncpa [#allocation4], 1 }

</bundles_post_ra>
